<compile_context>
chip_gen: v6e
topology: v6e:2x2x1
jax: 0.10.0
libtpu: 0.0.40
codegen_flags: <defaults>
</compile_context>

<pallas_src>
import functools

import jax
import jax.numpy as jnp
from jax import lax
from jax.experimental import pallas as pl
from jax.experimental.pallas import tpu as pltpu

_LN_EPS = 1e-5
_NT_DIMS = (((1,), (1,)), ((), ()))   # contract last dims of both operands (q @ k^T)


def _layer_norm_f32(x, w, b):
    mu = jnp.mean(x, axis=-1, keepdims=True)
    xc = x - mu
    var = jnp.mean(xc * xc, axis=-1, keepdims=True)
    return xc * lax.rsqrt(var + _LN_EPS) * w + b


def _gelu_tanh(x):
    # TODO(synk): PyTorch nn.GELU() is the exact erf form; the tanh approximation is
    # used in-kernel (EUP tanh), max deviation ~3e-4 (well under test tolerance).
    c = 0.7978845608028654  # sqrt(2/pi)
    return 0.5 * x * (1.0 + jnp.tanh(c * (x + 0.044715 * x * x * x)))


def _block_kernel(x_ref, ln1w_ref, ln1b_ref, wqkv_ref, wo_ref, bo_ref,
                  ln2w_ref, ln2b_ref, w1_ref, b1_ref, w2_ref, b2_ref,
                  o_ref, attn_sc, *, num_heads, n, c):
    hd = c // num_heads
    x = x_ref[0].astype(jnp.float32)                                   # (N, C) f32

    # ---- LayerNorm 1 (f32) -> bf16 MXU input --------------------------------
    xn1 = _layer_norm_f32(x, ln1w_ref[...], ln1b_ref[...]).astype(jnp.bfloat16)

    # ---- Fused QKV projection: one lane-dense (N, C) @ (C, 3C) matmul -------
    qkv = jnp.dot(xn1, wqkv_ref[...], preferred_element_type=jnp.float32)  # (N, 3C) f32
    q = qkv[:, 0 * c:1 * c].astype(jnp.bfloat16)   # scale already folded into Wq
    k = qkv[:, 1 * c:2 * c].astype(jnp.bfloat16)
    v = qkv[:, 2 * c:3 * c].astype(jnp.bfloat16)

    # ---- Per-head attention; heads written into a (N, C) scratch ------------
    for h in range(num_heads):
        lo, hi = h * hd, (h + 1) * hd
        q_h = q[:, lo:hi]                                               # (N, hd) bf16
        k_h = k[:, lo:hi]
        v_h = v[:, lo:hi]
        s = lax.dot_general(q_h, k_h, _NT_DIMS,
                            preferred_element_type=jnp.float32)          # (N, N) f32
        s = s - jnp.max(s, axis=-1, keepdims=True)
        p = jnp.exp(s)
        p = p * pl.reciprocal(jnp.sum(p, axis=-1, keepdims=True), approx=True)
        o_h = jnp.dot(p.astype(jnp.bfloat16), v_h,
                      preferred_element_type=jnp.float32)                # (N, hd) f32
        attn_sc[:, lo:hi] = o_h.astype(jnp.bfloat16)

    # ---- Single output projection (contraction depth C) + residual ----------
    proj = jnp.dot(attn_sc[...], wo_ref[...], preferred_element_type=jnp.float32)
    y1 = x + proj + bo_ref[...]                                         # (N, C) f32

    # ---- LayerNorm 2 + MLP (GELU) -------------------------------------------
    xn2 = _layer_norm_f32(y1, ln2w_ref[...], ln2b_ref[...]).astype(jnp.bfloat16)
    h1 = jnp.dot(xn2, w1_ref[...], preferred_element_type=jnp.float32) + b1_ref[...]
    h1 = _gelu_tanh(h1).astype(jnp.bfloat16)
    y2 = jnp.dot(h1, w2_ref[...], preferred_element_type=jnp.float32) + b2_ref[...]

    o_ref[0] = (y1 + y2).astype(o_ref.dtype)


def _const_spec(shape):
    zeros = (0,) * len(shape)
    return pl.BlockSpec(shape, lambda i, z=zeros: z)


def preprocess_params(params, *, num_heads):
    """One-time weight preprocessing (transposes / casts / scale fold).

    Kept out of the per-step call path so the multi-MiB transposes/casts are not
    re-emitted as XLA ops on every forward call.
    """
    C = params["w_proj"].shape[0]
    HM = params["w_fc1"].shape[0]
    assert C % num_heads == 0
    hd = C // num_heads
    scale = hd ** -0.5
    bf, f32 = jnp.bfloat16, jnp.float32

    wqkv = params["w_qkv"]                                      # (3C, C) PyTorch (out,in)
    wqkv = jnp.concatenate([wqkv[:C] * scale, wqkv[C:]], axis=0)  # fold scale into Wq
    return dict(
        wqkv_t=wqkv.T.astype(bf),                               # (C, 3C)
        wo=params["w_proj"].T.astype(bf),                       # (C, C)
        w1=params["w_fc1"].T.astype(bf),                        # (C, HM)
        w2=params["w_fc2"].T.astype(bf),                        # (HM, C)
        ln1w=params["ln1_w"].reshape(1, C).astype(f32),
        ln1b=params["ln1_b"].reshape(1, C).astype(f32),
        ln2w=params["ln2_w"].reshape(1, C).astype(f32),
        ln2b=params["ln2_b"].reshape(1, C).astype(f32),
        bo=params["b_proj"].reshape(1, C).astype(f32),
        b1=params["b_fc1"].reshape(1, HM).astype(f32),
        b2=params["b_fc2"].reshape(1, C).astype(f32),
    )


def block_forward(x, prepped, *, num_heads):
    """x: (B, N, C) f32; prepped: output of preprocess_params. Returns (B, N, C)."""
    B, N, C = x.shape
    HM = prepped["w1"].shape[1]

    kernel = functools.partial(_block_kernel, num_heads=num_heads, n=N, c=C)

    # rough cost hint for the XLA scheduler
    flops = B * (8 * N * C * C + 4 * N * N * C + 4 * N * C * HM)
    transcendentals = B * (num_heads * N * N + N * HM)
    bytes_accessed = (2 * B * N * C * 4
                      + (4 * C * C + 2 * C * HM) * 2
                      + (6 * C + HM) * 4)
    cost = pl.CostEstimate(flops=flops, transcendentals=transcendentals,
                           bytes_accessed=bytes_accessed)

    # Grid over batch elements: block (1, N, C).  B >= 2 gives >= 2 parallel grid
    # steps (megacore / v7x core sharding + DMA/compute overlap).
    return pl.pallas_call(
        kernel,
        out_shape=jax.ShapeDtypeStruct((B, N, C), x.dtype),
        grid=(B,),
        in_specs=[
            pl.BlockSpec((1, N, C), lambda i: (i, 0, 0)),   # x
            _const_spec((1, C)), _const_spec((1, C)),       # ln1 w, b
            _const_spec((C, 3 * C)),                        # fused Wqkv (pre-scaled Q)
            _const_spec((C, C)),                            # Wproj
            _const_spec((1, C)),                            # proj bias
            _const_spec((1, C)), _const_spec((1, C)),       # ln2 w, b
            _const_spec((C, HM)), _const_spec((1, HM)),     # fc1 w, b
            _const_spec((HM, C)), _const_spec((1, C)),      # fc2 w, b
        ],
        out_specs=pl.BlockSpec((1, N, C), lambda i: (i, 0, 0)),
        scratch_shapes=[pltpu.VMEM((N, C), jnp.bfloat16)],  # per-head attn outputs
        compiler_params=pltpu.CompilerParams(
            dimension_semantics=("parallel",),
            # v7x has only 64 MiB VMEM per TensorCore; 48 MiB leaves headroom there
            # and is comfortably inside v5e/v6e's 128 MiB.
            vmem_limit_bytes=48 * 1024 * 1024),
        cost_estimate=cost,
    )(x, prepped["ln1w"], prepped["ln1b"], prepped["wqkv_t"], prepped["wo"],
      prepped["bo"], prepped["ln2w"], prepped["ln2b"], prepped["w1"],
      prepped["b1"], prepped["w2"], prepped["b2"])


def _reference(x, params, num_heads):
    """Pure-JAX f32 reference mirroring the PyTorch Block forward."""
    B, N, C = x.shape
    hd = C // num_heads

    def ln(v, w, b):
        mu = v.mean(-1, keepdims=True)
        var = ((v - mu) ** 2).mean(-1, keepdims=True)
        return (v - mu) / jnp.sqrt(var + _LN_EPS) * w + b

    h = ln(x, params["ln1_w"], params["ln1_b"])
    qkv = jnp.einsum("bnc,oc->bno", h, params["w_qkv"])
    qkv = qkv.reshape(B, N, 3, num_heads, hd).transpose(2, 0, 3, 1, 4)
    q, k, v = qkv[0], qkv[1], qkv[2]
    s = jnp.einsum("bhqd,bhkd->bhqk", q, k) * (hd ** -0.5)
    p = jax.nn.softmax(s, axis=-1)
    o = jnp.einsum("bhqk,bhkd->bhqd", p, v).transpose(0, 2, 1, 3).reshape(B, N, C)
    attn = jnp.einsum("bnc,oc->bno", o, params["w_proj"]) + params["b_proj"]
    x = x + attn
    h2 = ln(x, params["ln2_w"], params["ln2_b"])
    m = jnp.einsum("bnc,hc->bnh", h2, params["w_fc1"]) + params["b_fc1"]
    m = jax.nn.gelu(m, approximate=False)          # exact erf GELU, as nn.GELU()
    m = jnp.einsum("bnh,ch->bnc", m, params["w_fc2"]) + params["b_fc2"]
    return x + m


if __name__ == "__main__":
    # Small config consistent with the module: embed_dim=32, num_heads=4,
    # mlp_ratio=4, qkv_bias=False, qk_scale=None, dropouts=0.0, init_values=0.
    B, N, C, H = 2, 16, 32, 4
    HM = 4 * C

    key = jax.random.PRNGKey(0)
    ks = jax.random.split(key, 12)
    x = jax.random.normal(ks[0], (B, N, C), dtype=jnp.float32)
    params = dict(
        ln1_w=1.0 + 0.1 * jax.random.normal(ks[1], (C,), jnp.float32),
        ln1_b=0.1 * jax.random.normal(ks[2], (C,), jnp.float32),
        w_qkv=0.05 * jax.random.normal(ks[3], (3 * C, C), jnp.float32),
        w_proj=0.05 * jax.random.normal(ks[4], (C, C), jnp.float32),
        b_proj=0.05 * jax.random.normal(ks[5], (C,), jnp.float32),
        ln2_w=1.0 + 0.1 * jax.random.normal(ks[6], (C,), jnp.float32),
        ln2_b=0.1 * jax.random.normal(ks[7], (C,), jnp.float32),
        w_fc1=0.05 * jax.random.normal(ks[8], (HM, C), jnp.float32),
        b_fc1=0.05 * jax.random.normal(ks[9], (HM,), jnp.float32),
        w_fc2=0.05 * jax.random.normal(ks[10], (C, HM), jnp.float32),
        b_fc2=0.05 * jax.random.normal(ks[11], (C,), jnp.float32),
    )

    prepped = preprocess_params(params, num_heads=H)   # one-time weight prep
    out = block_forward(x, prepped, num_heads=H)
    out = jax.block_until_ready(out)

    ref = _reference(x, params, H)
    max_err = float(jnp.max(jnp.abs(out - ref)))
    assert out.shape == (B, N, C)
    assert jnp.allclose(out, ref, atol=3e-2, rtol=3e-2), max_err

    print("KERNEL_OK")
</pallas_src>

<mosaic_0001>
module attributes {stable_mosaic.version = 11 : i64} {
  func.func @_block_kernel(%arg0: i32, %arg1: memref<1x16x32xf32, #tpu.memory_space<vmem>>, %arg2: memref<1x32xf32, #tpu.memory_space<vmem>>, %arg3: memref<1x32xf32, #tpu.memory_space<vmem>>, %arg4: memref<32x96xbf16, #tpu.memory_space<vmem>>, %arg5: memref<32x32xbf16, #tpu.memory_space<vmem>>, %arg6: memref<1x32xf32, #tpu.memory_space<vmem>>, %arg7: memref<1x32xf32, #tpu.memory_space<vmem>>, %arg8: memref<1x32xf32, #tpu.memory_space<vmem>>, %arg9: memref<32x128xbf16, #tpu.memory_space<vmem>>, %arg10: memref<1x128xf32, #tpu.memory_space<vmem>>, %arg11: memref<128x32xbf16, #tpu.memory_space<vmem>>, %arg12: memref<1x32xf32, #tpu.memory_space<vmem>>, %arg13: memref<1x16x32xf32, #tpu.memory_space<vmem>>, %arg14: memref<16x32xbf16, #tpu.memory_space<vmem>>) attributes {dimension_semantics = [#tpu.dimension_semantics<parallel>], iteration_bounds = array<i64: 2>, scalar_prefetch = 0 : i64, scratch_operands = 1 : i64, tpu.core_type = #tpu.core_type<tc>, window_params = [{transform_indices = @transform_0, window_bounds = array<i64: 1, 16, 32>}, {pipeline_mode = #tpu.pipeline_mode<synchronous>, transform_indices = @transform_1, window_bounds = array<i64: 1, 32>}, {pipeline_mode = #tpu.pipeline_mode<synchronous>, transform_indices = @transform_2, window_bounds = array<i64: 1, 32>}, {pipeline_mode = #tpu.pipeline_mode<synchronous>, transform_indices = @transform_3, window_bounds = array<i64: 32, 96>}, {pipeline_mode = #tpu.pipeline_mode<synchronous>, transform_indices = @transform_4, window_bounds = array<i64: 32, 32>}, {pipeline_mode = #tpu.pipeline_mode<synchronous>, transform_indices = @transform_5, window_bounds = array<i64: 1, 32>}, {pipeline_mode = #tpu.pipeline_mode<synchronous>, transform_indices = @transform_6, window_bounds = array<i64: 1, 32>}, {pipeline_mode = #tpu.pipeline_mode<synchronous>, transform_indices = @transform_7, window_bounds = array<i64: 1, 32>}, {pipeline_mode = #tpu.pipeline_mode<synchronous>, transform_indices = @transform_8, window_bounds = array<i64: 32, 128>}, {pipeline_mode = #tpu.pipeline_mode<synchronous>, transform_indices = @transform_9, window_bounds = array<i64: 1, 128>}, {pipeline_mode = #tpu.pipeline_mode<synchronous>, transform_indices = @transform_10, window_bounds = array<i64: 128, 32>}, {pipeline_mode = #tpu.pipeline_mode<synchronous>, transform_indices = @transform_11, window_bounds = array<i64: 1, 32>}, {transform_indices = @transform_12, window_bounds = array<i64: 1, 16, 32>}]} {
    %c0 = arith.constant 0 : index
    %c0_0 = arith.constant 0 : index
    %c0_1 = arith.constant 0 : index
    %0 = vector.load %arg1[%c0, %c0_0, %c0_1] : memref<1x16x32xf32, #tpu.memory_space<vmem>>, vector<1x16x32xf32>
    %1 = vector.shape_cast %0 : vector<1x16x32xf32> to vector<16x32xf32>
    %c0_2 = arith.constant 0 : index
    %c0_3 = arith.constant 0 : index
    %2 = vector.load %arg2[%c0_2, %c0_3] : memref<1x32xf32, #tpu.memory_space<vmem>>, vector<1x32xf32>
    %c0_4 = arith.constant 0 : index
    %c0_5 = arith.constant 0 : index
    %3 = vector.load %arg3[%c0_4, %c0_5] : memref<1x32xf32, #tpu.memory_space<vmem>>, vector<1x32xf32>
    %cst = arith.constant dense<0.000000e+00> : vector<16xf32>
    %4 = vector.multi_reduction <add>, %1, %cst [1] : vector<16x32xf32> to vector<16xf32>
    %5 = vector.shape_cast %4 : vector<16xf32> to vector<16x1xf32>
    %cst_6 = arith.constant 3.200000e+01 : f32
    %6 = vector.broadcast %cst_6 : f32 to vector<16x1xf32>
    %7 = arith.divf %5, %6 : vector<16x1xf32>
    %8 = vector.broadcast %7 : vector<16x1xf32> to vector<16x32xf32>
    %9 = arith.subf %1, %8 : vector<16x32xf32>
    %10 = arith.mulf %9, %9 : vector<16x32xf32>
    %cst_7 = arith.constant dense<0.000000e+00> : vector<16xf32>
    %11 = vector.multi_reduction <add>, %10, %cst_7 [1] : vector<16x32xf32> to vector<16xf32>
    %12 = vector.shape_cast %11 : vector<16xf32> to vector<16x1xf32>
    %cst_8 = arith.constant 3.200000e+01 : f32
    %13 = vector.broadcast %cst_8 : f32 to vector<16x1xf32>
    %14 = arith.divf %12, %13 : vector<16x1xf32>
    %cst_9 = arith.constant 9.99999974E-6 : f32
    %15 = vector.broadcast %cst_9 : f32 to vector<16x1xf32>
    %16 = arith.addf %14, %15 : vector<16x1xf32>
    %17 = math.rsqrt %16 : vector<16x1xf32>
    %18 = vector.broadcast %17 : vector<16x1xf32> to vector<16x32xf32>
    %19 = arith.mulf %9, %18 : vector<16x32xf32>
    %20 = vector.broadcast %2 : vector<1x32xf32> to vector<16x32xf32>
    %21 = arith.mulf %19, %20 : vector<16x32xf32>
    %22 = vector.broadcast %3 : vector<1x32xf32> to vector<16x32xf32>
    %23 = arith.addf %21, %22 : vector<16x32xf32>
    %24 = arith.truncf %23 : vector<16x32xf32> to vector<16x32xbf16>
    %c0_10 = arith.constant 0 : index
    %c0_11 = arith.constant 0 : index
    %25 = vector.load %arg4[%c0_10, %c0_11] : memref<32x96xbf16, #tpu.memory_space<vmem>>, vector<32x96xbf16>
    %cst_12 = arith.constant dense<0.000000e+00> : vector<16x96xf32>
    %26 = tpu.matmul %24, %25, %cst_12 {dimension_numbers = #tpu.dot_dimension_numbers<[1], [0], [0], [1], [0, 0, 1, 1], [], []>} : vector<16x32xbf16>, vector<32x96xbf16>, vector<16x96xf32> -> vector<16x96xf32>
    %27 = vector.extract_strided_slice %26 {offsets = [0, 0], sizes = [16, 32], strides = [1, 1]} : vector<16x96xf32> to vector<16x32xf32>
    %28 = arith.truncf %27 : vector<16x32xf32> to vector<16x32xbf16>
    %29 = vector.extract_strided_slice %26 {offsets = [0, 32], sizes = [16, 32], strides = [1, 1]} : vector<16x96xf32> to vector<16x32xf32>
    %30 = arith.truncf %29 : vector<16x32xf32> to vector<16x32xbf16>
    %31 = vector.extract_strided_slice %26 {offsets = [0, 64], sizes = [16, 32], strides = [1, 1]} : vector<16x96xf32> to vector<16x32xf32>
    %32 = arith.truncf %31 : vector<16x32xf32> to vector<16x32xbf16>
    %33 = vector.extract_strided_slice %28 {offsets = [0, 0], sizes = [16, 8], strides = [1, 1]} : vector<16x32xbf16> to vector<16x8xbf16>
    %34 = vector.extract_strided_slice %30 {offsets = [0, 0], sizes = [16, 8], strides = [1, 1]} : vector<16x32xbf16> to vector<16x8xbf16>
    %35 = vector.extract_strided_slice %32 {offsets = [0, 0], sizes = [16, 8], strides = [1, 1]} : vector<16x32xbf16> to vector<16x8xbf16>
    %cst_13 = arith.constant dense<0.000000e+00> : vector<16x16xf32>
    %36 = tpu.matmul %33, %34, %cst_13 {dimension_numbers = #tpu.dot_dimension_numbers<[1], [1], [0], [0], [0, 0, 1, 0], [], []>} : vector<16x8xbf16>, vector<16x8xbf16>, vector<16x16xf32> -> vector<16x16xf32>
    %cst_14 = arith.constant dense<0xFF800000> : vector<16xf32>
    %37 = vector.multi_reduction <maximumf>, %36, %cst_14 [1] : vector<16x16xf32> to vector<16xf32>
    %38 = vector.shape_cast %37 : vector<16xf32> to vector<16x1xf32>
    %39 = vector.broadcast %38 : vector<16x1xf32> to vector<16x16xf32>
    %40 = arith.subf %36, %39 : vector<16x16xf32>
    %41 = math.exp %40 : vector<16x16xf32>
    %cst_15 = arith.constant dense<0.000000e+00> : vector<16xf32>
    %42 = vector.multi_reduction <add>, %41, %cst_15 [1] : vector<16x16xf32> to vector<16xf32>
    %43 = vector.shape_cast %42 : vector<16xf32> to vector<16x1xf32>
    %44 = tpu.reciprocal %43 {approx = true} : vector<16x1xf32> -> vector<16x1xf32>
    %45 = vector.broadcast %44 : vector<16x1xf32> to vector<16x16xf32>
    %46 = arith.mulf %41, %45 : vector<16x16xf32>
    %47 = arith.truncf %46 : vector<16x16xf32> to vector<16x16xbf16>
    %cst_16 = arith.constant dense<0.000000e+00> : vector<16x8xf32>
    %48 = tpu.matmul %47, %35, %cst_16 {dimension_numbers = #tpu.dot_dimension_numbers<[1], [0], [0], [1], [0, 0, 1, 1], [], []>} : vector<16x16xbf16>, vector<16x8xbf16>, vector<16x8xf32> -> vector<16x8xf32>
    %49 = arith.truncf %48 : vector<16x8xf32> to vector<16x8xbf16>
    %c0_17 = arith.constant 0 : index
    %c0_18 = arith.constant 0 : index
    %50 = vector.load %arg14[%c0_17, %c0_18] : memref<16x32xbf16, #tpu.memory_space<vmem>>, vector<16x8xbf16>
    tpu.vector_store %arg14[%c0_17, %c0_18], %49 {strides = array<i32>} : memref<16x32xbf16, #tpu.memory_space<vmem>>, vector<16x8xbf16>,
    %51 = vector.extract_strided_slice %28 {offsets = [0, 8], sizes = [16, 8], strides = [1, 1]} : vector<16x32xbf16> to vector<16x8xbf16>
    %52 = vector.extract_strided_slice %30 {offsets = [0, 8], sizes = [16, 8], strides = [1, 1]} : vector<16x32xbf16> to vector<16x8xbf16>
    %53 = vector.extract_strided_slice %32 {offsets = [0, 8], sizes = [16, 8], strides = [1, 1]} : vector<16x32xbf16> to vector<16x8xbf16>
    %cst_19 = arith.constant dense<0.000000e+00> : vector<16x16xf32>
    %54 = tpu.matmul %51, %52, %cst_19 {dimension_numbers = #tpu.dot_dimension_numbers<[1], [1], [0], [0], [0, 0, 1, 0], [], []>} : vector<16x8xbf16>, vector<16x8xbf16>, vector<16x16xf32> -> vector<16x16xf32>
    %cst_20 = arith.constant dense<0xFF800000> : vector<16xf32>
    %55 = vector.multi_reduction <maximumf>, %54, %cst_20 [1] : vector<16x16xf32> to vector<16xf32>
    %56 = vector.shape_cast %55 : vector<16xf32> to vector<16x1xf32>
    %57 = vector.broadcast %56 : vector<16x1xf32> to vector<16x16xf32>
    %58 = arith.subf %54, %57 : vector<16x16xf32>
    %59 = math.exp %58 : vector<16x16xf32>
    %cst_21 = arith.constant dense<0.000000e+00> : vector<16xf32>
    %60 = vector.multi_reduction <add>, %59, %cst_21 [1] : vector<16x16xf32> to vector<16xf32>
    %61 = vector.shape_cast %60 : vector<16xf32> to vector<16x1xf32>
    %62 = tpu.reciprocal %61 {approx = true} : vector<16x1xf32> -> vector<16x1xf32>
    %63 = vector.broadcast %62 : vector<16x1xf32> to vector<16x16xf32>
    %64 = arith.mulf %59, %63 : vector<16x16xf32>
    %65 = arith.truncf %64 : vector<16x16xf32> to vector<16x16xbf16>
    %cst_22 = arith.constant dense<0.000000e+00> : vector<16x8xf32>
    %66 = tpu.matmul %65, %53, %cst_22 {dimension_numbers = #tpu.dot_dimension_numbers<[1], [0], [0], [1], [0, 0, 1, 1], [], []>} : vector<16x16xbf16>, vector<16x8xbf16>, vector<16x8xf32> -> vector<16x8xf32>
    %67 = arith.truncf %66 : vector<16x8xf32> to vector<16x8xbf16>
    %c0_23 = arith.constant 0 : index
    %c8 = arith.constant 8 : index
    %68 = vector.load %arg14[%c0_23, %c8] : memref<16x32xbf16, #tpu.memory_space<vmem>>, vector<16x8xbf16>
    tpu.vector_store %arg14[%c0_23, %c8], %67 {strides = array<i32>} : memref<16x32xbf16, #tpu.memory_space<vmem>>, vector<16x8xbf16>,
    %69 = vector.extract_strided_slice %28 {offsets = [0, 16], sizes = [16, 8], strides = [1, 1]} : vector<16x32xbf16> to vector<16x8xbf16>
    %70 = vector.extract_strided_slice %30 {offsets = [0, 16], sizes = [16, 8], strides = [1, 1]} : vector<16x32xbf16> to vector<16x8xbf16>
    %71 = vector.extract_strided_slice %32 {offsets = [0, 16], sizes = [16, 8], strides = [1, 1]} : vector<16x32xbf16> to vector<16x8xbf16>
    %cst_24 = arith.constant dense<0.000000e+00> : vector<16x16xf32>
    %72 = tpu.matmul %69, %70, %cst_24 {dimension_numbers = #tpu.dot_dimension_numbers<[1], [1], [0], [0], [0, 0, 1, 0], [], []>} : vector<16x8xbf16>, vector<16x8xbf16>, vector<16x16xf32> -> vector<16x16xf32>
    %cst_25 = arith.constant dense<0xFF800000> : vector<16xf32>
    %73 = vector.multi_reduction <maximumf>, %72, %cst_25 [1] : vector<16x16xf32> to vector<16xf32>
    %74 = vector.shape_cast %73 : vector<16xf32> to vector<16x1xf32>
    %75 = vector.broadcast %74 : vector<16x1xf32> to vector<16x16xf32>
    %76 = arith.subf %72, %75 : vector<16x16xf32>
    %77 = math.exp %76 : vector<16x16xf32>
    %cst_26 = arith.constant dense<0.000000e+00> : vector<16xf32>
    %78 = vector.multi_reduction <add>, %77, %cst_26 [1] : vector<16x16xf32> to vector<16xf32>
    %79 = vector.shape_cast %78 : vector<16xf32> to vector<16x1xf32>
    %80 = tpu.reciprocal %79 {approx = true} : vector<16x1xf32> -> vector<16x1xf32>
    %81 = vector.broadcast %80 : vector<16x1xf32> to vector<16x16xf32>
    %82 = arith.mulf %77, %81 : vector<16x16xf32>
    %83 = arith.truncf %82 : vector<16x16xf32> to vector<16x16xbf16>
    %cst_27 = arith.constant dense<0.000000e+00> : vector<16x8xf32>
    %84 = tpu.matmul %83, %71, %cst_27 {dimension_numbers = #tpu.dot_dimension_numbers<[1], [0], [0], [1], [0, 0, 1, 1], [], []>} : vector<16x16xbf16>, vector<16x8xbf16>, vector<16x8xf32> -> vector<16x8xf32>
    %85 = arith.truncf %84 : vector<16x8xf32> to vector<16x8xbf16>
    %c0_28 = arith.constant 0 : index
    %c16 = arith.constant 16 : index
    %86 = vector.load %arg14[%c0_28, %c16] : memref<16x32xbf16, #tpu.memory_space<vmem>>, vector<16x8xbf16>
    tpu.vector_store %arg14[%c0_28, %c16], %85 {strides = array<i32>} : memref<16x32xbf16, #tpu.memory_space<vmem>>, vector<16x8xbf16>,
    %87 = vector.extract_strided_slice %28 {offsets = [0, 24], sizes = [16, 8], strides = [1, 1]} : vector<16x32xbf16> to vector<16x8xbf16>
    %88 = vector.extract_strided_slice %30 {offsets = [0, 24], sizes = [16, 8], strides = [1, 1]} : vector<16x32xbf16> to vector<16x8xbf16>
    %89 = vector.extract_strided_slice %32 {offsets = [0, 24], sizes = [16, 8], strides = [1, 1]} : vector<16x32xbf16> to vector<16x8xbf16>
    %cst_29 = arith.constant dense<0.000000e+00> : vector<16x16xf32>
    %90 = tpu.matmul %87, %88, %cst_29 {dimension_numbers = #tpu.dot_dimension_numbers<[1], [1], [0], [0], [0, 0, 1, 0], [], []>} : vector<16x8xbf16>, vector<16x8xbf16>, vector<16x16xf32> -> vector<16x16xf32>
    %cst_30 = arith.constant dense<0xFF800000> : vector<16xf32>
    %91 = vector.multi_reduction <maximumf>, %90, %cst_30 [1] : vector<16x16xf32> to vector<16xf32>
    %92 = vector.shape_cast %91 : vector<16xf32> to vector<16x1xf32>
    %93 = vector.broadcast %92 : vector<16x1xf32> to vector<16x16xf32>
    %94 = arith.subf %90, %93 : vector<16x16xf32>
    %95 = math.exp %94 : vector<16x16xf32>
    %cst_31 = arith.constant dense<0.000000e+00> : vector<16xf32>
    %96 = vector.multi_reduction <add>, %95, %cst_31 [1] : vector<16x16xf32> to vector<16xf32>
    %97 = vector.shape_cast %96 : vector<16xf32> to vector<16x1xf32>
    %98 = tpu.reciprocal %97 {approx = true} : vector<16x1xf32> -> vector<16x1xf32>
    %99 = vector.broadcast %98 : vector<16x1xf32> to vector<16x16xf32>
    %100 = arith.mulf %95, %99 : vector<16x16xf32>
    %101 = arith.truncf %100 : vector<16x16xf32> to vector<16x16xbf16>
    %cst_32 = arith.constant dense<0.000000e+00> : vector<16x8xf32>
    %102 = tpu.matmul %101, %89, %cst_32 {dimension_numbers = #tpu.dot_dimension_numbers<[1], [0], [0], [1], [0, 0, 1, 1], [], []>} : vector<16x16xbf16>, vector<16x8xbf16>, vector<16x8xf32> -> vector<16x8xf32>
    %103 = arith.truncf %102 : vector<16x8xf32> to vector<16x8xbf16>
    %c0_33 = arith.constant 0 : index
    %c24 = arith.constant 24 : index
    %104 = vector.load %arg14[%c0_33, %c24] : memref<16x32xbf16, #tpu.memory_space<vmem>>, vector<16x8xbf16>
    tpu.vector_store %arg14[%c0_33, %c24], %103 {strides = array<i32>} : memref<16x32xbf16, #tpu.memory_space<vmem>>, vector<16x8xbf16>,
    %c0_34 = arith.constant 0 : index
    %c0_35 = arith.constant 0 : index
    %105 = vector.load %arg14[%c0_34, %c0_35] : memref<16x32xbf16, #tpu.memory_space<vmem>>, vector<16x32xbf16>
    %c0_36 = arith.constant 0 : index
    %c0_37 = arith.constant 0 : index
    %106 = vector.load %arg5[%c0_36, %c0_37] : memref<32x32xbf16, #tpu.memory_space<vmem>>, vector<32x32xbf16>
    %cst_38 = arith.constant dense<0.000000e+00> : vector<16x32xf32>
    %107 = tpu.matmul %105, %106, %cst_38 {dimension_numbers = #tpu.dot_dimension_numbers<[1], [0], [0], [1], [0, 0, 1, 1], [], []>} : vector<16x32xbf16>, vector<32x32xbf16>, vector<16x32xf32> -> vector<16x32xf32>
    %108 = arith.addf %1, %107 : vector<16x32xf32>
    %c0_39 = arith.constant 0 : index
    %c0_40 = arith.constant 0 : index
    %109 = vector.load %arg6[%c0_39, %c0_40] : memref<1x32xf32, #tpu.memory_space<vmem>>, vector<1x32xf32>
    %110 = vector.broadcast %109 : vector<1x32xf32> to vector<16x32xf32>
    %111 = arith.addf %108, %110 : vector<16x32xf32>
    %c0_41 = arith.constant 0 : index
    %c0_42 = arith.constant 0 : index
    %112 = vector.load %arg7[%c0_41, %c0_42] : memref<1x32xf32, #tpu.memory_space<vmem>>, vector<1x32xf32>
    %c0_43 = arith.constant 0 : index
    %c0_44 = arith.constant 0 : index
    %113 = vector.load %arg8[%c0_43, %c0_44] : memref<1x32xf32, #tpu.memory_space<vmem>>, vector<1x32xf32>
    %cst_45 = arith.constant dense<0.000000e+00> : vector<16xf32>
    %114 = vector.multi_reduction <add>, %111, %cst_45 [1] : vector<16x32xf32> to vector<16xf32>
    %115 = vector.shape_cast %114 : vector<16xf32> to vector<16x1xf32>
    %cst_46 = arith.constant 3.200000e+01 : f32
    %116 = vector.broadcast %cst_46 : f32 to vector<16x1xf32>
    %117 = arith.divf %115, %116 : vector<16x1xf32>
    %118 = vector.broadcast %117 : vector<16x1xf32> to vector<16x32xf32>
    %119 = arith.subf %111, %118 : vector<16x32xf32>
    %120 = arith.mulf %119, %119 : vector<16x32xf32>
    %cst_47 = arith.constant dense<0.000000e+00> : vector<16xf32>
    %121 = vector.multi_reduction <add>, %120, %cst_47 [1] : vector<16x32xf32> to vector<16xf32>
    %122 = vector.shape_cast %121 : vector<16xf32> to vector<16x1xf32>
    %cst_48 = arith.constant 3.200000e+01 : f32
    %123 = vector.broadcast %cst_48 : f32 to vector<16x1xf32>
    %124 = arith.divf %122, %123 : vector<16x1xf32>
    %cst_49 = arith.constant 9.99999974E-6 : f32
    %125 = vector.broadcast %cst_49 : f32 to vector<16x1xf32>
    %126 = arith.addf %124, %125 : vector<16x1xf32>
    %127 = math.rsqrt %126 : vector<16x1xf32>
    %128 = vector.broadcast %127 : vector<16x1xf32> to vector<16x32xf32>
    %129 = arith.mulf %119, %128 : vector<16x32xf32>
    %130 = vector.broadcast %112 : vector<1x32xf32> to vector<16x32xf32>
    %131 = arith.mulf %129, %130 : vector<16x32xf32>
    %132 = vector.broadcast %113 : vector<1x32xf32> to vector<16x32xf32>
    %133 = arith.addf %131, %132 : vector<16x32xf32>
    %134 = arith.truncf %133 : vector<16x32xf32> to vector<16x32xbf16>
    %c0_50 = arith.constant 0 : index
    %c0_51 = arith.constant 0 : index
    %135 = vector.load %arg9[%c0_50, %c0_51] : memref<32x128xbf16, #tpu.memory_space<vmem>>, vector<32x128xbf16>
    %cst_52 = arith.constant dense<0.000000e+00> : vector<16x128xf32>
    %136 = tpu.matmul %134, %135, %cst_52 {dimension_numbers = #tpu.dot_dimension_numbers<[1], [0], [0], [1], [0, 0, 1, 1], [], []>} : vector<16x32xbf16>, vector<32x128xbf16>, vector<16x128xf32> -> vector<16x128xf32>
    %c0_53 = arith.constant 0 : index
    %c0_54 = arith.constant 0 : index
    %137 = vector.load %arg10[%c0_53, %c0_54] : memref<1x128xf32, #tpu.memory_space<vmem>>, vector<1x128xf32>
    %138 = vector.broadcast %137 : vector<1x128xf32> to vector<16x128xf32>
    %139 = arith.addf %136, %138 : vector<16x128xf32>
    %cst_55 = arith.constant 5.000000e-01 : f32
    %140 = vector.broadcast %cst_55 : f32 to vector<16x128xf32>
    %141 = arith.mulf %140, %139 : vector<16x128xf32>
    %cst_56 = arith.constant 4.471500e-02 : f32
    %142 = vector.broadcast %cst_56 : f32 to vector<16x128xf32>
    %143 = arith.mulf %142, %139 : vector<16x128xf32>
    %144 = arith.mulf %143, %139 : vector<16x128xf32>
    %145 = arith.mulf %144, %139 : vector<16x128xf32>
    %146 = arith.addf %139, %145 : vector<16x128xf32>
    %cst_57 = arith.constant 0.797884583 : f32
    %147 = vector.broadcast %cst_57 : f32 to vector<16x128xf32>
    %148 = arith.mulf %147, %146 : vector<16x128xf32>
    %149 = math.tanh %148 : vector<16x128xf32>
    %cst_58 = arith.constant 1.000000e+00 : f32
    %150 = vector.broadcast %cst_58 : f32 to vector<16x128xf32>
    %151 = arith.addf %150, %149 : vector<16x128xf32>
    %152 = arith.mulf %141, %151 : vector<16x128xf32>
    %153 = arith.truncf %152 : vector<16x128xf32> to vector<16x128xbf16>
    %c0_59 = arith.constant 0 : index
    %c0_60 = arith.constant 0 : index
    %154 = vector.load %arg11[%c0_59, %c0_60] : memref<128x32xbf16, #tpu.memory_space<vmem>>, vector<128x32xbf16>
    %cst_61 = arith.constant dense<0.000000e+00> : vector<16x32xf32>
    %155 = tpu.matmul %153, %154, %cst_61 {dimension_numbers = #tpu.dot_dimension_numbers<[1], [0], [0], [1], [0, 0, 1, 1], [], []>} : vector<16x128xbf16>, vector<128x32xbf16>, vector<16x32xf32> -> vector<16x32xf32>
    %c0_62 = arith.constant 0 : index
    %c0_63 = arith.constant 0 : index
    %156 = vector.load %arg12[%c0_62, %c0_63] : memref<1x32xf32, #tpu.memory_space<vmem>>, vector<1x32xf32>
    %157 = vector.broadcast %156 : vector<1x32xf32> to vector<16x32xf32>
    %158 = arith.addf %155, %157 : vector<16x32xf32>
    %159 = arith.addf %111, %158 : vector<16x32xf32>
    %c0_64 = arith.constant 0 : index
    %c0_65 = arith.constant 0 : index
    %c0_66 = arith.constant 0 : index
    %160 = vector.load %arg13[%c0_64, %c0_65, %c0_66] : memref<1x16x32xf32, #tpu.memory_space<vmem>>, vector<1x16x32xf32>
    %161 = vector.shape_cast %160 : vector<1x16x32xf32> to vector<16x32xf32>
    %162 = vector.shape_cast %159 : vector<16x32xf32> to vector<1x16x32xf32>
    tpu.vector_store %arg13[%c0_64, %c0_65, %c0_66], %162 {strides = array<i32>} : memref<1x16x32xf32, #tpu.memory_space<vmem>>, vector<1x16x32xf32>,
    return
  }
  func.func @transform_0(%arg0: i32) -> (i32, i32, i32) {
    %c0_i32 = arith.constant 0 : i32
    %c0_i32_0 = arith.constant 0 : i32
    %c0_i32_1 = arith.constant 0 : i32
    return %arg0, %c0_i32, %c0_i32_0 : i32, i32, i32
  }
  func.func @transform_1(%arg0: i32) -> (i32, i32) {
    %c0_i32 = arith.constant 0 : i32
    %c0_i32_0 = arith.constant 0 : i32
    %c0_i32_1 = arith.constant 0 : i32
    return %c0_i32, %c0_i32_0 : i32, i32
  }
  func.func @transform_2(%arg0: i32) -> (i32, i32) {
    %c0_i32 = arith.constant 0 : i32
    %c0_i32_0 = arith.constant 0 : i32
    %c0_i32_1 = arith.constant 0 : i32
    return %c0_i32, %c0_i32_0 : i32, i32
  }
  func.func @transform_3(%arg0: i32) -> (i32, i32) {
    %c0_i32 = arith.constant 0 : i32
    %c0_i32_0 = arith.constant 0 : i32
    %c0_i32_1 = arith.constant 0 : i32
    return %c0_i32, %c0_i32_0 : i32, i32
  }
  func.func @transform_4(%arg0: i32) -> (i32, i32) {
    %c0_i32 = arith.constant 0 : i32
    %c0_i32_0 = arith.constant 0 : i32
    %c0_i32_1 = arith.constant 0 : i32
    return %c0_i32, %c0_i32_0 : i32, i32
  }
  func.func @transform_5(%arg0: i32) -> (i32, i32) {
    %c0_i32 = arith.constant 0 : i32
    %c0_i32_0 = arith.constant 0 : i32
    %c0_i32_1 = arith.constant 0 : i32
    return %c0_i32, %c0_i32_0 : i32, i32
  }
  func.func @transform_6(%arg0: i32) -> (i32, i32) {
    %c0_i32 = arith.constant 0 : i32
    %c0_i32_0 = arith.constant 0 : i32
    %c0_i32_1 = arith.constant 0 : i32
    return %c0_i32, %c0_i32_0 : i32, i32
  }
  func.func @transform_7(%arg0: i32) -> (i32, i32) {
    %c0_i32 = arith.constant 0 : i32
    %c0_i32_0 = arith.constant 0 : i32
    %c0_i32_1 = arith.constant 0 : i32
    return %c0_i32, %c0_i32_0 : i32, i32
  }
  func.func @transform_8(%arg0: i32) -> (i32, i32) {
    %c0_i32 = arith.constant 0 : i32
    %c0_i32_0 = arith.constant 0 : i32
    %c0_i32_1 = arith.constant 0 : i32
    return %c0_i32, %c0_i32_0 : i32, i32
  }
  func.func @transform_9(%arg0: i32) -> (i32, i32) {
    %c0_i32 = arith.constant 0 : i32
    %c0_i32_0 = arith.constant 0 : i32
    %c0_i32_1 = arith.constant 0 : i32
    return %c0_i32, %c0_i32_0 : i32, i32
  }
  func.func @transform_10(%arg0: i32) -> (i32, i32) {
    %c0_i32 = arith.constant 0 : i32
    %c0_i32_0 = arith.constant 0 : i32
    %c0_i32_1 = arith.constant 0 : i32
    return %c0_i32, %c0_i32_0 : i32, i32
  }
  func.func @transform_11(%arg0: i32) -> (i32, i32) {
    %c0_i32 = arith.constant 0 : i32
    %c0_i32_0 = arith.constant 0 : i32
    %c0_i32_1 = arith.constant 0 : i32
    return %c0_i32, %c0_i32_0 : i32, i32
  }
  func.func @transform_12(%arg0: i32) -> (i32, i32, i32) {
    %c0_i32 = arith.constant 0 : i32
    %c0_i32_0 = arith.constant 0 : i32
    %c0_i32_1 = arith.constant 0 : i32
    return %arg0, %c0_i32, %c0_i32_0 : i32, i32, i32
  }
}

</mosaic_0001>

<bundles_post_ra>
// kernel: tpu_custom_call.1
= control target key start
LH: loop header
LB: loop body
LE: loop exit
PB: predicated region body
PF: predicated region fallthrough
CT: control target
= control target key end

     0   :  { %17 = vsyncpa [#allocation4], 0  ;;  %s2525_s0 = inlined_call_operand.vmem [shape: f32[2,16,32], index: 0, kind: input, shape index: {}]   ;;  %s2526_s1 = inlined_call_operand.vmem [shape: f32[1,32], index: 1, kind: input, shape index: {}]   ;;  %s2527_s2 = inlined_call_operand.vmem [shape: f32[1,32], index: 2, kind: input, shape index: {}]   ;;  %s2528_s3 = inlined_call_operand.vmem [shape: bf16[32,96], index: 3, kind: input, shape index: {}]   ;;  %s2529_s4 = inlined_call_operand.vmem [shape: bf16[32,32], index: 4, kind: input, shape index: {}]   ;;  %s2530_s5 = inlined_call_operand.hbm [shape: f32[1,32], index: 5, kind: input, shape index: {}]   ;;  %s2531_s6 = inlined_call_operand.hbm [shape: f32[1,32], index: 6, kind: input, shape index: {}]   ;;  %s2532_s7 = inlined_call_operand.hbm [shape: f32[1,32], index: 7, kind: input, shape index: {}]   ;;  %s2533_s8 = inlined_call_operand.vmem [shape: bf16[32,128], index: 8, kind: input, shape index: {}]   ;;  %s2534_s9 = inlined_call_operand.hbm [shape: f32[1,128], index: 9, kind: input, shape index: {}]   ;;  %s2535_s10 = inlined_call_operand.vmem [shape: bf16[128,32], index: 10, kind: input, shape index: {}]   ;;  %s2536_s11 = inlined_call_operand.vmem [shape: f32[1,32], index: 11, kind: input, shape index: {}]   ;;  %s2537_s12 = inlined_call_operand.hbm [shape: f32[2,16,32], index: 12, kind: output, shape index: {}]  }
   0x1   :  { %18 = vsyncpa [#allocation7], 0 }
   0x2   :  { %19 = vsyncpa [#allocation10], 0 }
   0x3   :  { %20 = vsyncpa [#allocation5], 0 }
   0x4   :  { %22 = vsyncpa [#allocation5 + $0x1], 0  ;;  %s2175_s21 = smov 0   ;;  %s2177_s22 = smov 0  }
   0x5   :  { %s2179_s23 = smov 0   ;;  %s2181_s24 = smov 0  }
   0x6 LB: > { %2542 = sst [smem:[#allocation16_spill]] %s2082_s23  ;;  %s2196_s25 = sadd.s32 4294967295, %s2086_s24   ;;  %s2086_s24 = sphi %s2181_s24, %s2561_s24   ;;  %s2082_s23 = sphi %s2179_s23, %s2558_s23   ;;  %s2078_s22 = sphi %s2177_s22, %s2560_s22   ;;  %s2074_s21 = sphi %s2175_s21, %s2559_s21  }
   0x7   : > { %s1557_s26 = sadd.s32 4294967294, %s2086_s24   ;;  %s2200_s27 = sadd.s32 1, %s2086_s24  }
   0x8   : > { %s292_s28 = sadd.s32 1, %s2082_s23  ;;  %s289_s29 = ssub.s32 %s2086_s24, %s2200_s27 }
   0x9   : > { %p302_p0 = scmp.ne.s32.totalorder %s2082_s23, %s2078_s22  ;;  %p290_p1 = scmp.eq.s32.totalorder %s289_s29, 0 }
   0xa   : > { %p303_p2 = scmp.eq.s32.totalorder %s2196_s25, 1  ;;  %p308_p3 = scmp.ne.s32.totalorder %s2078_s22, %s2074_s21 }
   0xb   : > { %p309_p4 = scmp.eq.s32.totalorder %s1557_s26, 1  ;;  %p1558_p7 = scmp.ge.s32.totalorder %s2086_s24, 1 }
   0xc   : > { %s2211_s30 = scalar_select %p290_p1, %s2082_s23, %s292_s28  }
   0xd   : > { %p2213_p5 = por %p303_p2, %p302_p0  ;;  %p2217_p6 = por %p309_p4, %p308_p3 }
   0xe   : > { %2543 = sst [smem:[#allocation17_spill]] %s2211_s30  ;;  %p316_p8 = scmp.lt.s32.totalorder %s2086_s24, 3 }
   0xf   : > { %s2544_s13 = scalar_select %p2213_p5, 1, 0 }
  0x10   : > { %s2545_s14 = scalar_select %p2217_p6, 1, 0 }
  0x11   : > { %p2538_p9 = scmp.eq.s32.totalorder %s2196_s25, 0  ;;  %p2224_p10 = pnand %p1558_p7, %p316_p8 }
  0x12   : > { %s2088_s16 = smov [#allocation6]   ;;  %s2089_s18 = smov [#allocation3]  }
  0x13   : > { %s352_s17 = sshll.u32 %s2088_s16, 4  ;;  %p1772_p11 = pneg %p2224_p10  ;;  %s353_s17 = int_to_ptr.vmem [resolvable:$true] %s352_s17 }
  0x14   : > { %s341_s19 = sshll.u32 %s2089_s18, 4  ;;  %s2090_s26 = smov [#allocation8]   ;;  %s342_s19 = int_to_ptr.vmem [resolvable:$true] %s341_s19 }
  0x15   : > { %p2232_p12 = pnand %p2538_p9, %p1772_p11  ;;  %s363_s28 = sshll.u32 %s2090_s26, 4  ;;  %s2236_s28 = int_to_ptr.vmem [resolvable:$true] %s363_s28 }
  0x16   : > { %s1921_s29 = scalar_lea.vmem %s353_s17, 16  ;;  %s1928_s16 = scalar_lea.vmem %s353_s17, 32 }
  0x17   : > { %p1912_p13 = pneg %p2232_p12  ;;  %p1922_p0 = scmp.ne.s32.totalorder %s353_s17, %s1921_s29 }
  0x18   : > { %p1929_p3 = scmp.lt.s32.totalorder %s353_s17, %s353_s17  ;;  %p1930_p4 = scmp.lt.s32.totalorder %s1928_s16, %s1921_s29 }
  0x19   : > { %p1924_p1 = pnand %p1922_p0, %p1912_p13 }
  0x1a   : > { %p1931_p7 = por %p1930_p4, %p1929_p3 }
  0x1b   : > { %p1925_p2 = pneg %p1924_p1 }
  0x1d   : > { %p1932_p8 = pnand %p1931_p7, %p1925_p2 }
  0x1f   : > { %1935 = shalt.err (!%p1932_p8)
}
  0x20   : > { %1778 = dma.hbm_to_vmem [thread:$0]  (!%p2232_p12), %s2531_s6, 16, %s353_s17, [#allocation7]  }
  0x21   : > { %s1947_s30 = scalar_lea.vmem %s342_s19, 16  ;;  %s1954_s23 = scalar_lea.vmem %s342_s19, 32 }
  0x22   : > { %p1948_p11 = scmp.ne.s32.totalorder %s342_s19, %s1947_s30  ;;  %p1955_p1 = scmp.lt.s32.totalorder %s342_s19, %s342_s19 }
  0x23   : > { %p1956_p6 = scmp.lt.s32.totalorder %s1954_s23, %s1947_s30 }
  0x24   : > { %p1950_p9 = pnand %p1948_p11, %p1912_p13 }
  0x25   : > { %p1957_p5 = por %p1956_p6, %p1955_p1 }
  0x26   : > { %p1951_p0 = pneg %p1950_p9 }
  0x28   : > { %p1958_p3 = pnand %p1957_p5, %p1951_p0 }
  0x2a   : > { %1961 = shalt.err (!%p1958_p3)
}
  0x2b   : > { %1775 = dma.hbm_to_vmem [thread:$0]  (!%p2232_p12), %s2530_s5, 16, %s342_s19, [#allocation4]  }
  0x2c   : > { %s1973_s17 = scalar_lea.vmem %s2236_s28, 16  ;;  %s1980_s23 = scalar_lea.vmem %s2236_s28, 32 }
  0x2d   : > { %p1974_p2 = scmp.ne.s32.totalorder %s2236_s28, %s1973_s17  ;;  %p1981_p5 = scmp.lt.s32.totalorder %s2236_s28, %s2236_s28 }
  0x2e   : > { %p1982_p6 = scmp.lt.s32.totalorder %s1980_s23, %s1973_s17 }
  0x2f   : > { %p1976_p9 = pnand %p1974_p2, %p1912_p13 }
  0x30   : > { %p1983_p7 = por %p1982_p6, %p1981_p5 }
  0x31   : > { %p1977_p4 = pneg %p1976_p9 }
  0x33   : > { %p1984_p8 = pnand %p1983_p7, %p1977_p4 }
  0x35   : > { %1987 = shalt.err (!%p1984_p8)
}
  0x36   : > { %1781 = dma.hbm_to_vmem [thread:$0]  (!%p2232_p12), %s2532_s7, 16, %s2236_s28, [#allocation7]  }
  0x37   : > { %s2091_s19 = smov [#allocation9]  }
  0x38   : > { %s377_s26 = sshll.u32 %s2091_s19, 4  ;;  %s378_s26 = int_to_ptr.vmem [resolvable:$true] %s377_s26 }
  0x39   : > { %s1999_s29 = scalar_lea.vmem %s378_s26, 16  ;;  %s2006_s16 = scalar_lea.vmem %s378_s26, 32 }
  0x3a   : > { %p2000_p11 = scmp.ne.s32.totalorder %s378_s26, %s1999_s29  ;;  %p2007_p3 = scmp.lt.s32.totalorder %s378_s26, %s378_s26 }
  0x3b   : > { %p2008_p2 = scmp.lt.s32.totalorder %s2006_s16, %s1999_s29 }
  0x3c   : > { %p2002_p0 = pnand %p2000_p11, %p1912_p13 }
  0x3d   : > { %p2009_p9 = por %p2008_p2, %p2007_p3 }
  0x3e   : > { %p2003_p1 = pneg %p2002_p0 }
  0x40   : > { %p2010_p4 = pnand %p2009_p9, %p2003_p1 }
  0x42   : > { %2013 = shalt.err (!%p2010_p4)
}
  0x43   : > { %1784 = dma.hbm_to_vmem [thread:$0]  (!%p2232_p12), %s2534_s9, 16, %s378_s26, [#allocation10]  }
  0x44   : > { %404 = sbr.rel (%p2224_p10) target bundleno = 2535 (0x9e7), region = 68  ;;  %p2548_p5 = scmp.eq.s32.totalorder (!%p2224_p10), %s2196_s25, 0 }
  0x49   : > { %2057 = dma.done.wait (%p2548_p5), [#allocation4], 16   ;;  %p2549_p13 = pmov %p2548_p5 }
  0x4a   : > { %p2550_p6 = pmov %p2548_p5 }
  0x4b   : > { %2059 = vsyncadd (%p2549_p13), [#allocation4], 4294967280 }
  0x4c   : > { %2061 = dma.done.wait (%p2550_p6), [#allocation7], 32   ;;  %p2551_p7 = pmov %p2548_p5 }
  0x4d   : > { %p2552_p8 = pmov %p2548_p5 }
  0x4e   : > { %2063 = vsyncadd (%p2551_p7), [#allocation7], 4294967264 }
  0x4f   : > { %2065 = dma.done.wait (%p2552_p8), [#allocation10], 16   ;;  %p2553_p12 = pmov %p2548_p5 }
  0x50   : > { %p458_p10 = scmp.lt.s32.totalorder %s2196_s25, 1  ;;  %vm468_vm0 = vcmask 261120   ;;  %v1851_v14 = vld [vmem:[%s2528_s3 + $0x8] sm:$0xff]   ;;  %v2092_v15 = vmov 0.0   ;;  %vm2093_vm1 = vmmov 0   ;;  %v1852_v16 = vld [vmem:[%s2528_s3] sm:$0xff]  }
  0x51   : > { %2067 = vsyncadd (%p2553_p12), [#allocation10], 4294967280  ;;  %1662 = vmatprep.subr.bf16.mxu0 %v2092_v15  ;;  %1666 = vmatprep.mubr.msk.bf16.mxu0 %vm2093_vm1, %v2092_v15  ;;  %v1572_v25 = vld [vmem:[%s2526_s1] ss:$0 sm:$0xff]  ;;  %s2094_s28 = smov 88   ;;  %s2095_s30 = smov 96  }
  0x52   : > { %s459_s15 = scalar_select %p458_p10, %s2196_s25, 1  ;;  %1663 = vmatpush3.bf16.msra.mxu0 %v1851_v14  ;;  %1682 = vmatprep.subr.bf16.mxu1 %v2092_v15  ;;  %v1573_v29 = vld [vmem:[%s2527_s2] ss:$0 sm:$0xff]  ;;  %vm577_vm2 = vcmask 64512   ;;  %vm625_vm3 = vcmask 130048   ;;  %vm704_vm4 = vcmask 60416  }
  0x53   : > { %1664 = vmatprep.subr.bf16.mxu0 %v2092_v15  ;;  %1684 = vmatprep.mubr.msk.bf16.mxu1 %vm2093_vm1, %v2092_v15  ;;  %s2097_s19 = smov 112   ;;  %s2098_s26 = smov 80   ;;  %vm840_vm5 = vcmask 126016   ;;  %vm976_vm6 = vcmask 191616   ;;  %vm1112_vm7 = vcmask 257216  }
  0x54   : > { %s1618_s20 = sshll.u32 %s459_s15, 4  ;;  %s2099_s29 = smov 104  }
  0x55   : > { %s462_s18 = scalar_lea.vmem %s2525_s0, %s1618_s20  ;;  %s2100_s16 = smov 72  }
  0x56   : > { %v2297_v0 = vld [vmem:[%s462_s18] sm:$0xff]  ;;  %v2299_v1 = vld [vmem:[%s462_s18 + $0x8] sm:$0xff]  ;;  %1665 = vmatpush3.bf16.msra.mxu0 %v1852_v16  ;;  %s2096_s18 = smov 120   ;;  %s2101_s17 = smov 64  }
  0x57   : > { %v469_v2 = vsel %vm468_vm0, %v2297_v0, 0.0  ;;  %v472_v3 = vsel %vm468_vm0, %v2299_v1, 0.0  ;;  %1670 = vmatprep.subr.bf16.mxu0 %v2092_v15  ;;  %s2102_s23 = smov 48   ;;  %s2103_s15 = smov 40  }
  0x58   : > { %470 = vadd.xlane.f32.xlu0 %v469_v2  ;;  %s2104_s20 = smov 56   ;;  %p2554_p0 = scmp.ne.s32.totalorder %s2544_s13, 0 }
  0x5c   : > { %473 = vadd.xlane.f32.xlu0 %v472_v3 }
  0xe1   : > { %v471_v4 = vpop.xlane.xlu0 %470 }
  0xe2   : > { %v476_v5 = vmul.f32 0.03125, %v471_v4 }
  0xe4   : > { %v478_v6 = vsub.f32 %v2297_v0, %v476_v5 }
  0xe5   : > { %v474_v7 = vpop.xlane.xlu0 %473 }
  0xe6   : > { %v477_v8 = vmul.f32 0.03125, %v474_v7  ;;  %v480_v9 = vmul.f32 %v478_v6, %v478_v6 }
  0xe8   : > { %v479_v10 = vsub.f32 %v2299_v1, %v477_v8  ;;  %v482_v11 = vsel %vm468_vm0, %v480_v9, 0.0 }
  0xe9   : > { %483 = vadd.xlane.f32.xlu1 %v482_v11 }
  0xea   : > { %v481_v12 = vmul.f32 %v479_v10, %v479_v10 }
  0xec   : > { %v485_v13 = vsel %vm468_vm0, %v481_v12, 0.0 }
  0xed   : > { %486 = vadd.xlane.f32.xlu1 %v485_v13 }
 0x172   : > { %v484_v17 = vpop.xlane.xlu1 %483 }
 0x173   : > { %v488_v18 = vmul.f32 0.03125, %v484_v17 }
 0x175   : > { %v490_v19 = vadd.f32 1e-05, %v488_v18 }
 0x176   : > { %v487_v20 = vpop.xlane.xlu1 %486 }
 0x177   : > { %1866 = vrsqrt.f32 %v490_v19  ;;  %v489_v21 = vmul.f32 0.03125, %v487_v20 }
 0x179   : > { %v491_v22 = vadd.f32 1e-05, %v489_v21 }
 0x17b   : > { %1868 = vrsqrt.f32 %v491_v22 }
 0x184   : > { %v1867_v23 = vpop.eup %1866 }
 0x185   : > { %v494_v24 = vmul.f32 %v1867_v23, %v478_v6 }
 0x187   : > { %v502_v28 = vmul.f32 %v1572_v25, %v494_v24 }
 0x188   : > { %v1869_v26 = vpop.eup %1868 }
 0x189   : > { %v495_v27 = vmul.f32 %v1869_v26, %v479_v10  ;;  %v510_v31 = vadd.f32 %v1573_v29, %v502_v28 }
 0x18b   : > { %v503_v30 = vmul.f32 %v1572_v25, %v495_v27 }
 0x18d   : > { %v511_v32 = vadd.f32 %v1573_v29, %v503_v30 }
 0x18f   : > { %v512_v33 = vpack.c.bf16 %v511_v32, %v510_v31 }
 0x191   : > { %1667 = vmatmul.mubr.msk.bf16.vlgmr.msra.gmra.mxu0 %vm468_vm0, %v512_v33 }
 0x192   : > { %1672 = vmatprep.mubr.msk.bf16.mxu0 %vm2093_vm1, %v2092_v15 }
 0x251   : > { %v566_v34 = vpop.f32.mrf.mxu0 }
 0x253   : > { %v1668_v35 = vpop.f32.mrf.mxu0 }
 0x255   : > { %v569_v36 = vpop.f32.mrf.mxu0 }
 0x256   : > { %v2332_v37 = vpack.c.bf16 %v569_v36, %v566_v34 }
 0x257   : > { %v1669_v38 = vpop.f32.mrf.mxu0 }
 0x258   : > { %709 = vrot.lane.b32.xlu1 %v2332_v37, %s2094_s28  ;;  %575 = vrot.lane.b32.xlu0 %v2332_v37, %s2095_s30  ;;  %s2541_s28 = smov 8   ;;  %s1627_s30 = sshll.u32 %s2196_s25, 8 }
 0x25c   : > { %707 = vrot.lane.b32.xlu1 %v2332_v37, %s2096_s18  ;;  %843 = vrot.lane.b32.xlu0 %v2332_v37, %s2097_s19  ;;  %s2106_s19 = smov 16  }
 0x260   : > { %845 = vrot.lane.b32.xlu1 %v2332_v37, %s2098_s26  ;;  %979 = vrot.lane.b32.xlu0 %v2332_v37, %s2099_s29 }
 0x264   : > { %981 = vrot.lane.b32.xlu1 %v2332_v37, %s2100_s16  ;;  %s2107_s16 = smov 24  }
 0x2ca   : > { %v710_v39 = vpop.permute.xlu1 %709  ;;  %v576_v40 = vpop.permute.xlu0 %575 }
 0x2cb   : > { %v582_v41 = vsel %vm577_vm2, %v576_v40, 0  ;;  %v715_v42 = vsel %vm577_vm2, %v710_v39, 0 }
 0x2cc   : > { %1671 = vmatpush3.bf16.xpose.msra.mxu0 %v582_v41  ;;  %1683 = vmatpush3.bf16.xpose.msra.mxu1 %v715_v42 }
 0x2cd   : > { %1694 = vmatprep.subr.bf16.mxu1 %v2092_v15  ;;  %1676 = vmatprep.subr.bf16.mxu0 %v2092_v15 }
 0x2ce   : > { %v708_v43 = vpop.permute.xlu1 %707  ;;  %v844_v47 = vpop.permute.xlu0 %843 }
 0x2d2   : > { %v846_v44 = vpop.permute.xlu1 %845  ;;  %v980_v49 = vpop.permute.xlu0 %979 }
 0x2d3   : > { %v851_v45 = vsel %vm577_vm2, %v846_v44, 0  ;;  %1673 = vmatmul.mubr.msk.bf16.vlgmr.msra.gmra.mxu0 %vm577_vm2, %v2332_v37  ;;  %1685 = vmatmul.mubr.msk.bf16.vlgmr.msra.gmra.mxu1 %vm577_vm2, %v708_v43 }
 0x2d4   : > { %1695 = vmatpush3.bf16.xpose.msra.mxu1 %v851_v45  ;;  %1696 = vmatprep.mubr.msk.bf16.mxu1 %vm2093_vm1, %v2092_v15 }
 0x2d5   : > { %1706 = vmatprep.subr.bf16.mxu1 %v2092_v15  ;;  %1678 = vmatprep.mubr.msk.bf16.mxu0 %vm2093_vm1, %v2092_v15 }
 0x2d6   : > { %v982_v46 = vpop.permute.xlu1 %981 }
 0x2d7   : > { %v987_v48 = vsel %vm577_vm2, %v982_v46, 0 }
 0x2db   : > { %1697 = vmatmul.mubr.msk.bf16.vlgmr.msra.gmra.mxu1 %vm577_vm2, %v844_v47 }
 0x2dc   : > { %1707 = vmatpush3.bf16.xpose.msra.mxu1 %v987_v48  ;;  %1708 = vmatprep.mubr.msk.bf16.mxu1 %vm2093_vm1, %v2092_v15 }
 0x2dd   : > { %1718 = vmatprep.subr.bf16.mxu1 %v2092_v15 }
 0x2e3   : > { %1709 = vmatmul.mubr.msk.bf16.vlgmr.msra.gmra.mxu1 %vm577_vm2, %v980_v49 }
 0x2e4   : > { %1722 = vmatprep.mubr.msk.bf16.mxu1 %vm2093_vm1, %v2092_v15 }
 0x393   : > { %v618_v50 = vpop.f32.mrf.mxu0  ;;  %v751_v51 = vpop.f32.mrf.mxu1 }
 0x394   : > { %v626_v52 = vsel %vm625_vm3, %v618_v50, -inf  ;;  %v758_v62 = vsel %vm625_vm3, %v751_v51, -inf }
 0x395   : > { %v1686_v53 = vpop.f32.mrf.mxu1  ;;  %627 = vmax.xlane.f32.xlu1 %v626_v52  ;;  %v1674_v54 = vpop.f32.mrf.mxu0 }
 0x397   : > { %v621_v55 = vpop.f32.mrf.mxu0  ;;  %v754_v56 = vpop.f32.mrf.mxu1 }
 0x398   : > { %v629_v57 = vsel %vm625_vm3, %v621_v55, -inf  ;;  %v761_v3 = vsel %vm625_vm3, %v754_v56, -inf }
 0x399   : > { %v1687_v58 = vpop.f32.mrf.mxu1  ;;  %630 = vmax.xlane.f32.xlu0 %v629_v57  ;;  %v1675_v59 = vpop.f32.mrf.mxu0 }
 0x39b   : > { %v887_v60 = vpop.f32.mrf.mxu1 }
 0x39c   : > { %v894_v61 = vsel %vm625_vm3, %v887_v60, -inf }
 0x39d   : > { %v1698_v63 = vpop.f32.mrf.mxu1  ;;  %895 = vmax.xlane.f32.xlu1 %v894_v61  ;;  %759 = vmax.xlane.f32.xlu0 %v758_v62 }
 0x39f   : > { %v890_v2 = vpop.f32.mrf.mxu1 }
 0x3a0   : > { %v897_v7 = vsel %vm625_vm3, %v890_v2, -inf }
 0x3a1   : > { %v1699_v4 = vpop.f32.mrf.mxu1  ;;  %762 = vmax.xlane.f32.xlu0 %v761_v3 }
 0x3a3   : > { %v1023_v5 = vpop.f32.mrf.mxu1 }
 0x3a4   : > { %v1030_v6 = vsel %vm625_vm3, %v1023_v5, -inf }
 0x3a5   : > { %v1710_v8 = vpop.f32.mrf.mxu1  ;;  %1031 = vmax.xlane.f32.xlu1 %v1030_v6  ;;  %898 = vmax.xlane.f32.xlu0 %v897_v7 }
 0x3a7   : > { %v1026_v9 = vpop.f32.mrf.mxu1 }
 0x3a8   : > { %v1033_v10 = vsel %vm625_vm3, %v1026_v9, -inf }
 0x3a9   : > { %v1711_v11 = vpop.f32.mrf.mxu1  ;;  %1034 = vmax.xlane.f32.xlu0 %v1033_v10 }
 0x3b6   : > { %649 = vrot.lane.b32.xlu1 %v2332_v37, %s2101_s17  ;;  %s455_s17 = sand.u32 1, %s2078_s22  }
 0x3b7   : > { %s2484_s25 = scalar_lea.sflag [#allocation5], %s455_s17 }
 0x41e   : > { %v628_v12 = vpop.xlane.xlu1 %627 }
 0x41f   : > { %v632_v13 = vsub.f32 %v618_v50, %v628_v12 }
 0x421   : > { %v634_v14 = vmul.f32 1.442695, %v632_v13 }
 0x422   : > { %v631_v16 = vpop.xlane.xlu0 %630 }
 0x423   : > { %1870 = vpow2.f32 %v634_v14  ;;  %v633_v17 = vsub.f32 %v621_v55, %v631_v16 }
 0x425   : > { %v636_v18 = vmul.f32 1.442695, %v633_v17 }
 0x426   : > { %v896_v19 = vpop.xlane.xlu1 %895  ;;  %v760_v20 = vpop.xlane.xlu0 %759 }
 0x427   : > { %1872 = vpow2.f32 %v636_v18  ;;  %v900_v21 = vsub.f32 %v887_v60, %v896_v19  ;;  %v764_v22 = vsub.f32 %v751_v51, %v760_v20 }
 0x429   : > { %v766_v23 = vmul.f32 1.442695, %v764_v22  ;;  %v902_v24 = vmul.f32 1.442695, %v900_v21 }
 0x42a   : > { %v763_v25 = vpop.xlane.xlu0 %762 }
 0x42b   : > { %v765_v26 = vsub.f32 %v754_v56, %v763_v25  ;;  %1874 = vpow2.f32 %v766_v23 }
 0x42c   : > { %1876 = vpow2.f32 %v902_v24 }
 0x42d   : > { %v768_v27 = vmul.f32 1.442695, %v765_v26 }
 0x42e   : > { %v1032_v28 = vpop.xlane.xlu1 %1031  ;;  %v899_v29 = vpop.xlane.xlu0 %898 }
 0x42f   : > { %1878 = vpow2.f32 %v768_v27  ;;  %v1036_v30 = vsub.f32 %v1023_v5, %v1032_v28  ;;  %v901_v31 = vsub.f32 %v890_v2, %v899_v29 }
 0x430   : > { %v1871_v32 = vpop.eup %1870 }
 0x431   : > { %v1038_v33 = vmul.f32 1.442695, %v1036_v30  ;;  %v904_v34 = vmul.f32 1.442695, %v901_v31  ;;  %v638_v35 = vsel %vm625_vm3, %v1871_v32, 0.0 }
 0x432   : > { %639 = vadd.xlane.f32.xlu1 %v638_v35  ;;  %v650_v36 = vpop.permute.xlu1 %649  ;;  %v1035_v38 = vpop.xlane.xlu0 %1034 }
 0x433   : > { %1880 = vpow2.f32 %v1038_v33  ;;  %v1037_v39 = vsub.f32 %v1026_v9, %v1035_v38  ;;  %1677 = vmatpush3.bf16.msra.mxu0 %v650_v36 }
 0x434   : > { %v1873_v40 = vpop.eup %1872  ;;  %1882 = vpow2.f32 %v904_v34  ;;  %1688 = vmatprep.subr.bf16.mxu0 %v2092_v15 }
 0x435   : > { %v1040_v41 = vmul.f32 1.442695, %v1037_v39  ;;  %v641_v42 = vsel %vm625_vm3, %v1873_v40, 0.0 }
 0x436   : > { %642 = vadd.xlane.f32.xlu0 %v641_v42  ;;  %v1854_v42 = vld [vmem:[%s2529_s4] sm:$0xff]  }
 0x437   : > { %1884 = vpow2.f32 %v1040_v41 }
 0x438   : > { %v1875_v43 = vpop.eup %1874 }
 0x439   : > { %v770_v44 = vsel %vm625_vm3, %v1875_v43, 0.0  ;;  %v1877_v45 = vpop.eup %1876 }
 0x43a   : > { %771 = vadd.xlane.f32.xlu1 %v770_v44  ;;  %v906_v48 = vsel %vm625_vm3, %v1877_v45, 0.0 }
 0x43c   : > { %v1879_v46 = vpop.eup %1878 }
 0x43d   : > { %v773_v47 = vsel %vm625_vm3, %v1879_v46, 0.0 }
 0x43e   : > { %774 = vadd.xlane.f32.xlu0 %v773_v47  ;;  %907 = vadd.xlane.f32.xlu1 %v906_v48 }
 0x440   : > { %v2377_v49 = vpop.eup %1880 }
 0x441   : > { %v1883_v50 = vpop.eup %1882  ;;  %v1042_v51 = vsel %vm625_vm3, %v2377_v49, 0.0 }
 0x442   : > { %v909_v52 = vsel %vm625_vm3, %v1883_v50, 0.0  ;;  %1043 = vadd.xlane.f32.xlu1 %v1042_v51 }
 0x443   : > { %910 = vadd.xlane.f32.xlu0 %v909_v52 }
 0x444   : > { %v1885_v53 = vpop.eup %1884 }
 0x445   : > { %v1045_v54 = vsel %vm625_vm3, %v1885_v53, 0.0 }
 0x447   : > { %1046 = vadd.xlane.f32.xlu0 %v1045_v54 }
 0x453   : > { %917 = vrot.lane.b32.xlu1 %v2332_v37, %s2102_s23 }
 0x457   : > { %1053 = vrot.lane.b32.xlu1 %v2332_v37, %s2103_s15  ;;  %s2108_s15 = smov [#allocation11]  }
 0x45d   : > { %781 = vrot.lane.b32.xlu0 %v2332_v37, %s2104_s20  ;;  %s1569_s20 = sshll.u32 %s455_s17, 4 }
 0x45e   : > { %s457_s18 = scalar_lea.vmem [#allocation11], %s1569_s20  ;;  %s2018_s20 = sshll.u32 %s2108_s15, 4  ;;  %s2019_s20 = int_to_ptr.vmem [resolvable:$false] %s2018_s20 }
 0x4bb   : > { %v640_v55 = vpop.xlane.xlu1 %639 }
 0x4bc   : > { %1886 = vrcp.f32 %v640_v55 }
 0x4bf   : > { %v643_v56 = vpop.xlane.xlu0 %642 }
 0x4c0   : > { %1888 = vrcp.f32 %v643_v56 }
 0x4c3   : > { %v772_v57 = vpop.xlane.xlu1 %771 }
 0x4c4   : > { %1890 = vrcp.f32 %v772_v57 }
 0x4c7   : > { %v775_v58 = vpop.xlane.xlu0 %774  ;;  %v908_v59 = vpop.xlane.xlu1 %907 }
 0x4c8   : > { %1892 = vrcp.f32 %v775_v58 }
 0x4c9   : > { %v1887_v60 = vpop.eup %1886  ;;  %1894 = vrcp.f32 %v908_v59  ;;  %v1597_v59 = vld [vmem:[#allocation3] ss:$0 sm:$0xff] }
 0x4ca   : > { %v646_v63 = vmul.f32 %v1887_v60, %v1871_v32 }
 0x4cb   : > { %v1044_v5 = vpop.xlane.xlu1 %1043 }
 0x4cc   : > { %v911_v61 = vpop.xlane.xlu0 %910 }
 0x4cd   : > { %v1889_v62 = vpop.eup %1888  ;;  %1896 = vrcp.f32 %v911_v61 }
 0x4ce   : > { %v647_v2 = vmul.f32 %v1889_v62, %v1873_v40  ;;  %v1853_v40 = vld [vmem:[%s2529_s4 + $0x8] sm:$0xff]  }
 0x4cf   : > { %v918_v12 = vpop.permute.xlu1 %917  ;;  %1719 = vmatpush3.bf16.msra.mxu1 %v1853_v40  ;;  %v1863_v40 = vld [vmem:[%s2535_s10 + $0x10] sm:$0xff]  }
 0x4d0   : > { %v1047_v3 = vpop.xlane.xlu0 %1046  ;;  %v648_v4 = vpack.c.bf16 %v647_v2, %v646_v63  ;;  %1720 = vmatprep.subr.bf16.mxu1 %v2092_v15 }
 0x4d1   : > { %v1891_v37 = vpop.eup %1890  ;;  %1898 = vrcp.f32 %v1047_v3 }
 0x4d2   : > { %1679 = vmatmul.mubr.msk.bf16.vlgmr.msra.gmra.mxu0 %vm625_vm3, %v648_v4  ;;  %1900 = vrcp.f32 %v1044_v5  ;;  %v778_v8 = vmul.f32 %v1891_v37, %v1875_v43 }
 0x4d3   : > { %1690 = vmatprep.mubr.msk.bf16.mxu0 %vm2093_vm1, %v2092_v15  ;;  %v1054_v19 = vpop.permute.xlu1 %1053  ;;  %1721 = vmatpush3.bf16.msra.mxu1 %v1854_v42  ;;  %v1865_v42 = vld [vmem:[%s2535_s10] sm:$0xff]  }
 0x4d4   : > { %v782_v6 = vpop.permute.xlu0 %781  ;;  %1734 = vmatprep.subr.bf16.mxu1 %v2092_v15 }
 0x4d5   : > { %v1893_v7 = vpop.eup %1892  ;;  %1689 = vmatpush3.bf16.msra.mxu0 %v782_v6 }
 0x4d6   : > { %1700 = vmatprep.subr.bf16.mxu0 %v2092_v15  ;;  %v779_v9 = vmul.f32 %v1893_v7, %v1879_v46  ;;  %v1895_v11 = vpop.eup %1894 }
 0x4d7   : > { %v914_v16 = vmul.f32 %v1895_v11, %v1877_v45 }
 0x4d8   : > { %v780_v10 = vpack.c.bf16 %v779_v9, %v778_v8 }
 0x4da   : > { %1691 = vmatmul.mubr.msk.bf16.vlgmr.msra.gmra.mxu0 %vm625_vm3, %v780_v10  ;;  %v1897_v13 = vpop.eup %1896 }
 0x4db   : > { %1701 = vmatpush3.bf16.msra.mxu0 %v918_v12  ;;  %1702 = vmatprep.mubr.msk.bf16.mxu0 %vm2093_vm1, %v2092_v15  ;;  %v915_v14 = vmul.f32 %v1897_v13, %v1883_v50 }
 0x4dc   : > { %1712 = vmatprep.subr.bf16.mxu0 %v2092_v15 }
 0x4dd   : > { %v916_v17 = vpack.c.bf16 %v915_v14, %v914_v16  ;;  %v1856_v14 = vld [vmem:[%s2533_s8 + $0x8] sm:$0xff]   ;;  %v1857_v16 = vld [vmem:[%s2533_s8] sm:$0xff]  }
 0x4de   : > { %v1899_v18 = vpop.eup %1898 }
 0x4df   : > { %v1901_v20 = vpop.eup %1900  ;;  %v1051_v21 = vmul.f32 %v1899_v18, %v1885_v53 }
 0x4e0   : > { %v1050_v22 = vmul.f32 %v1901_v20, %v2377_v49 }
 0x4e2   : > { %1703 = vmatmul.mubr.msk.bf16.vlgmr.msra.gmra.mxu0 %vm625_vm3, %v916_v17  ;;  %v1052_v23 = vpack.c.bf16 %v1051_v21, %v1050_v22 }
 0x4e3   : > { %1713 = vmatpush3.bf16.msra.mxu0 %v1054_v19  ;;  %1714 = vmatprep.mubr.msk.bf16.mxu0 %vm2093_vm1, %v2092_v15 }
 0x4e4   : > { %1726 = vmatprep.subr.bf16.mxu0 %v2092_v15 }
 0x4ea   : > { %1715 = vmatmul.mubr.msk.bf16.vlgmr.msra.gmra.mxu0 %vm625_vm3, %v1052_v23 }
 0x4eb   : > { %1730 = vmatprep.mubr.msk.bf16.mxu0 %vm2093_vm1, %v2092_v15  ;;  %1727 = vmatpush3.bf16.msra.mxu0 %v1856_v14 }
 0x4ec   : > { %1728 = vmatprep.subr.bf16.mxu0 %v2092_v15 }
 0x4ef   : > { %1729 = vmatpush3.bf16.msra.mxu0 %v1857_v16 }
 0x592   : > { %v689_v24 = vpop.f32.mrf.mxu0 }
 0x593   : > { %v1619_v25 = vpack.c.bf16 %v689_v24, %v689_v24 }
 0x594   : > { %v1680_v26 = vpop.f32.mrf.mxu0 }
 0x595   : > { %705 = vst.msk [vmem:[#allocation2] sm:$0xf] %vm704_vm4, %v1619_v25  ;;  %v1598_v25 = vld [vmem:[#allocation6] ss:$0 sm:$0xff] }
 0x596   : > { %v692_v27 = vpop.f32.mrf.mxu0 }
 0x597   : > { %v1620_v28 = vpack.c.bf16 %v692_v27, %v692_v27 }
 0x598   : > { %v1681_v29 = vpop.f32.mrf.mxu0 }
 0x599   : > { %706 = vst.msk [vmem:[#allocation2 + $0x4] sm:$0xf] %vm704_vm4, %v1620_v28  ;;  %v1599_v29 = vld [vmem:[#allocation8] ss:$0 sm:$0xff] }
 0x59a   : > { %v821_v30 = vpop.f32.mrf.mxu0 }
 0x59b   : > { %v1621_v31 = vpack.c.bf16 %v821_v30, %v821_v30 }
 0x59c   : > { %v1692_v32 = vpop.f32.mrf.mxu0 }
 0x59d   : > { %834 = vrot.lane.b32.xlu1 %v1621_v31, %s2541_s28 }
 0x59e   : > { %v824_v33 = vpop.f32.mrf.mxu0 }
 0x59f   : > { %v1622_v34 = vpack.c.bf16 %v824_v33, %v824_v33 }
 0x5a0   : > { %v1693_v35 = vpop.f32.mrf.mxu0 }
 0x5a1   : > { %836 = vrot.lane.b32.xlu0 %v1622_v34, %s2541_s28  ;;  %v1858_v34 = vld [vmem:[%s2535_s10 + $0x38] sm:$0xff]   ;;  %v1859_v35 = vld [vmem:[%s2535_s10 + $0x30] sm:$0xff]  }
 0x5a2   : > { %v957_v36 = vpop.f32.mrf.mxu0 }
 0x5a3   : > { %v1623_v38 = vpack.c.bf16 %v957_v36, %v957_v36  ;;  %v1860_v36 = vld [vmem:[%s2535_s10 + $0x28] sm:$0xff]  }
 0x5a4   : > { %v1704_v39 = vpop.f32.mrf.mxu0 }
 0x5a5   : > { %970 = vrot.lane.b32.xlu1 %v1623_v38, %s2106_s19  ;;  %v1861_v38 = vld [vmem:[%s2535_s10 + $0x20] sm:$0xff]   ;;  %v1862_v39 = vld [vmem:[%s2535_s10 + $0x18] sm:$0xff]  }
 0x5a6   : > { %v960_v41 = vpop.f32.mrf.mxu0 }
 0x5a7   : > { %v1624_v43 = vpack.c.bf16 %v960_v41, %v960_v41  ;;  %v1864_v41 = vld [vmem:[%s2535_s10 + $0x8] sm:$0xff]  }
 0x5a8   : > { %v1705_v44 = vpop.f32.mrf.mxu0 }
 0x5a9   : > { %972 = vrot.lane.b32.xlu0 %v1624_v43, %s2106_s19  ;;  %v1600_v43 = vld [vmem:[#allocation9] ss:$0 sm:$0xff]  ;;  %s1454_s19 = sshll.u32 %s457_s18, 4  ;;  %s2481_s19 = int_to_ptr.vmem [resolvable:$true] %s1454_s19 }
 0x5aa   : > { %v1093_v45 = vpop.f32.mrf.mxu0  ;;  %s2014_s23 = scalar_lea.vmem %s2481_s19, 256  ;;  %p2021_p2 = scmp.lt.s32.totalorder %s2481_s19, %s2019_s20 }
 0x5ab   : > { %v1625_v46 = vpack.c.bf16 %v1093_v45, %v1093_v45  ;;  %p2015_p11 = scmp.ne.s32.totalorder %s2481_s19, %s2014_s23 }
 0x5ac   : > { %v1716_v47 = vpop.f32.mrf.mxu0 }
 0x5ad   : > { %1106 = vrot.lane.b32.xlu1 %v1625_v46, %s2107_s16  ;;  %p2016_p1 = pnand %p2015_p11, %p2554_p0 }
 0x5ae   : > { %v1096_v48 = vpop.f32.mrf.mxu0 }
 0x5af   : > { %v1626_v49 = vpack.c.bf16 %v1096_v48, %v1096_v48  ;;  %p2017_p3 = pneg %p2016_p1 }
 0x5b0   : > { %v1717_v50 = vpop.f32.mrf.mxu0 }
 0x5b1   : > { %1108 = vrot.lane.b32.xlu0 %v1626_v49, %s2107_s16  ;;  %s2478_s16 = scalar_lea.hbm %s2537_s12, %s1627_s30  ;;  %s2020_s30 = scalar_lea.vmem %s2019_s20, 512 }
 0x5b2   : > { %p2022_p9 = scmp.lt.s32.totalorder %s2020_s30, %s2014_s23 }
 0x5b4   : > { %p2023_p4 = por %p2022_p9, %p2021_p2 }
 0x5b6   : > { %p2024_p5 = pnand %p2023_p4, %p2017_p3 }
 0x60f   : > { %v835_v51 = vpop.permute.xlu1 %834 }
 0x610   : > { %841 = vst.msk [vmem:[#allocation2] sm:$0xf] %vm840_vm5, %v835_v51 }
 0x613   : > { %v837_v52 = vpop.permute.xlu0 %836 }
 0x614   : > { %842 = vst.msk [vmem:[#allocation2 + $0x4] sm:$0xf] %vm840_vm5, %v837_v52 }
 0x617   : > { %v971_v53 = vpop.permute.xlu1 %970 }
 0x618   : > { %977 = vst.msk [vmem:[#allocation2] sm:$0xf] %vm976_vm6, %v971_v53 }
 0x61b   : > { %v973_v54 = vpop.permute.xlu0 %972 }
 0x61c   : > { %978 = vst.msk [vmem:[#allocation2 + $0x4] sm:$0xf] %vm976_vm6, %v973_v54 }
 0x61f   : > { %v1107_v55 = vpop.permute.xlu1 %1106 }
 0x620   : > { %1113 = vst.msk [vmem:[#allocation2] sm:$0xf] %vm1112_vm7, %v1107_v55 }
 0x623   : > { %v1109_v56 = vpop.permute.xlu0 %1108 }
 0x624   : > { %1114 = vst.msk [vmem:[#allocation2 + $0x4] sm:$0xf] %vm1112_vm7, %v1109_v56 }
 0x62b   : > { %v1855_v57 = vld [vmem:[#allocation2] sm:$0xff]  }
 0x62c   : > { %1723 = vmatmul.mubr.msk.bf16.vlgmr.msra.gmra.mxu1 %vm468_vm0, %v1855_v57 }
 0x62d   : > { %1750 = vmatprep.mubr.msk.bf16.mxu1 %vm2093_vm1, %v2092_v15  ;;  %1735 = vmatpush3.bf16.msra.mxu1 %v1858_v34 }
 0x62e   : > { %1736 = vmatprep.subr.bf16.mxu1 %v2092_v15 }
 0x631   : > { %1737 = vmatpush3.bf16.msra.mxu1 %v1859_v35 }
 0x632   : > { %1738 = vmatprep.subr.bf16.mxu1 %v2092_v15 }
 0x635   : > { %1739 = vmatpush3.bf16.msra.mxu1 %v1860_v36 }
 0x636   : > { %1740 = vmatprep.subr.bf16.mxu1 %v2092_v15 }
 0x639   : > { %1741 = vmatpush3.bf16.msra.mxu1 %v1861_v38 }
 0x63a   : > { %1742 = vmatprep.subr.bf16.mxu1 %v2092_v15 }
 0x63d   : > { %1743 = vmatpush3.bf16.msra.mxu1 %v1862_v39 }
 0x63e   : > { %1744 = vmatprep.subr.bf16.mxu1 %v2092_v15 }
 0x641   : > { %1745 = vmatpush3.bf16.msra.mxu1 %v1863_v40 }
 0x642   : > { %1746 = vmatprep.subr.bf16.mxu1 %v2092_v15 }
 0x645   : > { %1747 = vmatpush3.bf16.msra.mxu1 %v1864_v41 }
 0x646   : > { %1748 = vmatprep.subr.bf16.mxu1 %v2092_v15 }
 0x649   : > { %1749 = vmatpush3.bf16.msra.mxu1 %v1865_v42 }
 0x6ec   : > { %v1175_v58 = vpop.f32.mrf.mxu1 }
 0x6ed   : > { %v1182_v60 = vadd.f32 %v1175_v58, %v2297_v0 }
 0x6ee   : > { %v1724_v61 = vpop.f32.mrf.mxu1 }
 0x6ef   : > { %v2416_v62 = vadd.f32 %v1597_v59, %v1182_v60 }
 0x6f0   : > { %v1178_v63 = vpop.f32.mrf.mxu1 }
 0x6f1   : > { %v1183_v2 = vadd.f32 %v1178_v63, %v2299_v1  ;;  %v1195_v3 = vsel %vm468_vm0, %v2416_v62, 0.0 }
 0x6f2   : > { %1196 = vadd.xlane.f32.xlu1 %v1195_v3  ;;  %v1725_v4 = vpop.f32.mrf.mxu1 }
 0x6f3   : > { %v2421_v37 = vadd.f32 %v1597_v59, %v1183_v2 }
 0x6f5   : > { %v1198_v5 = vsel %vm468_vm0, %v2421_v37, 0.0 }
 0x6f6   : > { %1199 = vadd.xlane.f32.xlu0 %v1198_v5 }
 0x77b   : > { %v1197_v6 = vpop.xlane.xlu1 %1196 }
 0x77c   : > { %v1201_v7 = vmul.f32 0.03125, %v1197_v6 }
 0x77e   : > { %v1203_v0 = vsub.f32 %v2416_v62, %v1201_v7  ;;  %v1604_v7 = vld [vmem:[%s2536_s11] ss:$0 sm:$0xff] }
 0x77f   : > { %v1200_v8 = vpop.xlane.xlu0 %1199 }
 0x780   : > { %v1202_v9 = vmul.f32 0.03125, %v1200_v8  ;;  %v1205_v10 = vmul.f32 %v1203_v0, %v1203_v0 }
 0x782   : > { %v1204_v1 = vsub.f32 %v2421_v37, %v1202_v9  ;;  %v1207_v11 = vsel %vm468_vm0, %v1205_v10, 0.0 }
 0x783   : > { %1208 = vadd.xlane.f32.xlu0 %v1207_v11 }
 0x784   : > { %v1206_v12 = vmul.f32 %v1204_v1, %v1204_v1 }
 0x786   : > { %v1210_v13 = vsel %vm468_vm0, %v1206_v12, 0.0 }
 0x787   : > { %1211 = vadd.xlane.f32.xlu0 %v1210_v13 }
 0x80c   : > { %v1209_v17 = vpop.xlane.xlu0 %1208 }
 0x80d   : > { %v1213_v18 = vmul.f32 0.03125, %v1209_v17 }
 0x80f   : > { %v1215_v19 = vadd.f32 1e-05, %v1213_v18 }
 0x810   : > { %v1212_v20 = vpop.xlane.xlu0 %1211 }
 0x811   : > { %1902 = vrsqrt.f32 %v1215_v19  ;;  %v1214_v21 = vmul.f32 0.03125, %v1212_v20 }
 0x813   : > { %v1216_v22 = vadd.f32 1e-05, %v1214_v21 }
 0x815   : > { %1904 = vrsqrt.f32 %v1216_v22 }
 0x81e   : > { %v1903_v23 = vpop.eup %1902 }
 0x81f   : > { %v1219_v24 = vmul.f32 %v1903_v23, %v1203_v0 }
 0x821   : > { %v1227_v28 = vmul.f32 %v1598_v25, %v1219_v24 }
 0x822   : > { %v1905_v26 = vpop.eup %1904 }
 0x823   : > { %v1220_v27 = vmul.f32 %v1905_v26, %v1204_v1  ;;  %v1235_v31 = vadd.f32 %v1599_v29, %v1227_v28 }
 0x825   : > { %v1228_v30 = vmul.f32 %v1598_v25, %v1220_v27 }
 0x827   : > { %v1236_v32 = vadd.f32 %v1599_v29, %v1228_v30 }
 0x829   : > { %v1237_v33 = vpack.c.bf16 %v1236_v32, %v1235_v31 }
 0x82b   : > { %1731 = vmatmul.mubr.msk.bf16.vlgmr.msra.gmra.mxu0 %vm468_vm0, %v1237_v33 }
 0x8eb   : > { %v1298_v44 = vpop.f32.mrf.mxu0 }
 0x8ec   : > { %v1299_v45 = vadd.f32 %v1600_v43, %v1298_v44 }
 0x8ed   : > { %v1732_v46 = vpop.f32.mrf.mxu0 }
 0x8ee   : > { %v1307_v47 = vmul.f32 0.044715, %v1299_v45  ;;  %v1305_v63 = vmul.f32 0.5, %v1299_v45 }
 0x8ef   : > { %v1301_v48 = vpop.f32.mrf.mxu0 }
 0x8f0   : > { %v1309_v49 = vmul.f32 %v1307_v47, %v1299_v45  ;;  %v1302_v50 = vadd.f32 %v1600_v43, %v1301_v48 }
 0x8f1   : > { %v1733_v51 = vpop.f32.mrf.mxu0 }
 0x8f2   : > { %v1311_v52 = vmul.f32 %v1309_v49, %v1299_v45  ;;  %v1308_v53 = vmul.f32 0.044715, %v1302_v50  ;;  %v1306_v2 = vmul.f32 0.5, %v1302_v50 }
 0x8f4   : > { %v1313_v54 = vadd.f32 %v1311_v52, %v1299_v45  ;;  %v1310_v55 = vmul.f32 %v1308_v53, %v1302_v50 }
 0x8f6   : > { %v1315_v56 = vmul.f32 0.7978846, %v1313_v54  ;;  %v1312_v57 = vmul.f32 %v1310_v55, %v1302_v50 }
 0x8f8   : > { %1906 = vtanh.f32 %v1315_v56  ;;  %v1314_v58 = vadd.f32 %v1312_v57, %v1302_v50 }
 0x8fa   : > { %v1316_v15 = vmul.f32 0.7978846, %v1314_v58 }
 0x8fc   : > { %1908 = vtanh.f32 %v1316_v15 }
 0x905   : > { %v1907_v59 = vpop.eup %1906 }
 0x906   : > { %v1319_v60 = vadd.f32 1.0, %v1907_v59 }
 0x908   : > { %v1321_v4 = vmul.f32 %v1319_v60, %v1305_v63 }
 0x909   : > { %v1909_v61 = vpop.eup %1908 }
 0x90a   : > { %v1320_v3 = vadd.f32 1.0, %v1909_v61 }
 0x90c   : > { %v1322_v5 = vmul.f32 %v1320_v3, %v1306_v2 }
 0x90e   : > { %v1323_v6 = vpack.c.bf16 %v1322_v5, %v1321_v4 }
 0x910   : > { %1751 = vmatmul.mubr.bf16.vlgmr.msra.gmra.mxu1 %v1323_v6 }
 0x9d0   : > { %v1429_v0 = vpop.f32.mrf.mxu1 }
 0x9d1   : > { %v1430_v8 = vadd.f32 %v1604_v7, %v1429_v0 }
 0x9d2   : > { %v1752_v9 = vpop.f32.mrf.mxu1 }
 0x9d3   : > { %v1436_v10 = vadd.f32 %v1430_v8, %v2416_v62 }
 0x9d4   : > { %v1432_v1 = vpop.f32.mrf.mxu1 }
 0x9d5   : > { %1438 = vst.msk [vmem:[%s457_s18] sm:$0xff] %vm468_vm0, %v1436_v10  ;;  %v1433_v11 = vadd.f32 %v1604_v7, %v1432_v1 }
 0x9d6   : > { %v1753_v12 = vpop.f32.mrf.mxu1 }
 0x9d7   : > { %v1437_v13 = vadd.f32 %v1433_v11, %v2421_v37 }
 0x9d9   : > { %1439 = vst.msk [vmem:[%s457_s18 + $0x8] sm:$0xff] %vm468_vm0, %v1437_v13 }
 0x9da   : > { %2027 = shalt.err (!%p2024_p5)
}
 0x9db   : > { %s2028_s17 = scalar_lea.hbm %s2478_s16, 256  ;;  %s2032_s29 = scalar_lea.hbm %s2537_s12, 512 }
 0x9dc   : > { %p2029_p13 = scmp.ne.s32.totalorder %s2478_s16, %s2028_s17  ;;  %p2033_p8 = scmp.lt.s32.totalorder %s2478_s16, %s2537_s12 }
 0x9dd   : > { %p2034_p12 = scmp.lt.s32.totalorder %s2032_s29, %s2028_s17 }
 0x9de   : > { %p2030_p6 = pnand %p2029_p13, %p2554_p0 }
 0x9df   : > { %p2035_p10 = por %p2034_p12, %p2033_p8 }
 0x9e0   : > { %p2031_p7 = pneg %p2030_p6 }
 0x9e2   : > { %p2036_p11 = pnand %p2035_p10, %p2031_p7 }
 0x9e4   : > { %2039 = shalt.err (!%p2036_p11)
}
 0x9e5   : > { %s2109_s23 = smov 128   ;;  %s2555_s20 = smov 8  }
 0x9e6   : > { %1770 = dma.vmem_to_hbm [thread:$0]  (%p2554_p0), %s2481_s19, 256, %s2478_s16, %s2484_s25, %s2109_s23, %s2109_s23, %s2555_s20  }
 0x9e7 PF: > { %p1797_p1 = scmp.ge.s32.totalorder %s2086_s24, 2  ;;  %s1469_s30 = sand.u32 1, %s2074_s21  }
 0x9e8   : > { %p2556_p3 = scmp.ne.s32.totalorder %s2545_s14, 0  ;;  %s1470_s28 = scalar_lea.sflag [#allocation5], %s1469_s30 }
 0x9ea   : > { %p1786_p2 = pnand %p1797_p1, %p2556_p3 }
 0x9ec   : > { %p1787_p9 = pneg %p1786_p2 }
 0x9ee   : > { %2069 = dma.done.wait (%p1787_p9), %s1470_s28, 256  }
 0x9ef   : > { %2071 = vsyncadd (%p1787_p9), %s1470_s28, 4294967040  ;;  %s2557_s13 = sld [smem:[#allocation16_spill]]  ;;  %p25_p4 = scmp.ge.s32.totalorder %s2200_s27, 4  }
 0x9f0   : > { %s2558_s23 = sld [smem:[#allocation17_spill]]  ;;  %s2559_s21 = smov %s2078_s22 }
 0x9f1   : > { %s2561_s24 = smov %s2200_s27  ;;  %27 = sbr.rel (!%p25_p4) target bundleno = 6 (0x6), region = 120 }
 0x9f5   : > { %s2560_s22 = smov %s2557_s13 }
 0x9f6   :  { %1475 = vsyncpa [#allocation4], 1 }
 0x9f7   :  { %1477 = vsyncpa [#allocation4 + $0x1], 1 }
 0x9f8   :  { %1478 = vsyncpa [#allocation7], 1 }
 0x9f9   :  { %1479 = vsyncpa [#allocation10], 1 }
 0x9fa   :  { %1480 = vsyncpa [#allocation5], 1 }
 0x9fb   :  { %1482 = vsyncpa [#allocation5 + $0x1], 1 }

</bundles_post_ra>
